<compile_context>
chip_gen: v6e
topology: v6e:2x2x1
jax: 0.10.0
libtpu: 0.0.40
codegen_flags: <defaults>
</compile_context>

<pallas_src>
import functools

import jax
import jax.numpy as jnp
from jax.experimental import pallas as pl
from jax.experimental.pallas import tpu as pltpu

BN_EPS = 1e-5
LEAKY_SLOPE = 0.01          # PyTorch nn.LeakyReLU default

_S_TILE_MAX = 8192          # lanes streamed per spatial tile (multiple of 128)
_PER_BUF_CAP = 16 * 1024 * 1024


def _vmem_budget():
    """Generation-aware scoped-VMEM limit and per-input-buffer budget."""
    try:
        cap = int(pltpu.get_tpu_info().vmem_capacity_bytes)
    except Exception:
        cap = 64 * 1024 * 1024                       # conservative: v7x-sized VMEM
    vmem_limit = min(3 * cap // 4, 64 * 1024 * 1024)  # 64 MiB v5e/v6e, 48 MiB v7x
    per_buf = min(_PER_BUF_CAP,
                  max(2 * 1024 * 1024, (vmem_limit - 4 * 1024 * 1024) // 2))
    return vmem_limit, per_buf


def _sublane_granule(dtype):
    # Sub-32-bit dtypes pack along sublanes: f32 -> 8, bf16 -> 16, int8/fp8 -> 32.
    return max(8, 32 // jnp.dtype(dtype).itemsize)


def _choose_row_tile(rows, row_bytes, per_buf, granule):
    """Row tile: fits per-buffer budget, sublane-granule aligned, >=2 blocks for megacore."""
    budget_rows = max(granule, (per_buf // max(row_bytes, 1)) // granule * granule)
    r_tile = min(rows, budget_rows)
    if rows >= 2 * granule:
        half_rows = -(-rows // 2)                         # ceil(rows / 2)
        half_tile = -(-half_rows // granule) * granule    # round up to granule
        r_tile = min(r_tile, half_tile)                   # guarantees >= 2 row blocks
    return r_tile


def _lane_chunk_sum(tile, n_chunks):
    """(r, n_chunks*128) f32 -> (r, 128) using only lane-aligned VALU adds (no XLU)."""
    acc = tile[:, 0:128]
    for c in range(1, n_chunks):
        acc = acc + tile[:, c * 128:(c + 1) * 128]
    return acc


def _pool_kernel_1d(x_ref, o_ref, *, inv_spatial):
    """Whole spatial extent in one tile: reduce + scale + store directly."""
    tile = x_ref[...].astype(jnp.float32)
    o_ref[...] = jnp.sum(tile, axis=-1, keepdims=True) * inv_spatial


def _pool_kernel_2d(x_ref, o_ref, acc_ref, *, spatial, s_tile, n_si, inv_spatial):
    """Streamed spatial reduction with a lane-dense (r_tile, 128) f32 accumulator."""
    si = pl.program_id(1)
    n_chunks = s_tile // 128

    @pl.when(si == 0)
    def _():
        acc_ref[...] = jnp.zeros_like(acc_ref)

    tile = x_ref[...].astype(jnp.float32)

    if spatial % s_tile == 0:
        acc_ref[...] += _lane_chunk_sum(tile, n_chunks)
    else:
        # Ragged tail: masking only runs on the final spatial step.
        @pl.when(si < n_si - 1)
        def _():
            acc_ref[...] += _lane_chunk_sum(tile, n_chunks)

        @pl.when(si == n_si - 1)
        def _():
            valid = spatial - (n_si - 1) * s_tile          # static python int
            col = jax.lax.broadcasted_iota(jnp.int32, tile.shape, 1)
            masked = jnp.where(col < valid, tile, 0.0)
            acc_ref[...] += _lane_chunk_sum(masked, n_chunks)

    @pl.when(si == n_si - 1)
    def _():
        # Single cross-lane (XLU) reduce + lane-1 store per row block.
        o_ref[...] = jnp.sum(acc_ref[...], axis=-1, keepdims=True) * inv_spatial


def _adaptive_avg_pool_rows(x2, vmem_limit, per_buf):
    """x2: (R, S) in its native dtype; returns (R, 1) f32 row means."""
    R, S = x2.shape
    itemsize = jnp.dtype(x2.dtype).itemsize
    granule = _sublane_granule(x2.dtype)
    inv_spatial = float(1.0 / S)
    cost = pl.CostEstimate(flops=int(R) * int(S), transcendentals=0,
                           bytes_accessed=int(R) * int(S) * itemsize + int(R) * 4)

    if S <= _S_TILE_MAX:
        # One spatial block per row block: contiguous HBM reads, no scratch, no mask.
        # NOTE: a ragged last ROW block reads garbage rows; their sums land only in
        # out-of-bounds output rows which Pallas drops, so this is safe.
        # TODO(synk): for tiny feature maps (H*W < 128) lanes are under-utilised; a
        # row-packing layout would recover bandwidth but is not implemented here.
        r_tile = _choose_row_tile(R, S * itemsize, per_buf, granule)
        return pl.pallas_call(
            functools.partial(_pool_kernel_1d, inv_spatial=inv_spatial),
            out_shape=jax.ShapeDtypeStruct((R, 1), jnp.float32),
            grid=(pl.cdiv(R, r_tile),),
            in_specs=[pl.BlockSpec((r_tile, S), lambda ri: (ri, 0))],
            out_specs=pl.BlockSpec((r_tile, 1), lambda ri: (ri, 0)),
            compiler_params=pltpu.CompilerParams(
                dimension_semantics=("parallel",),
                vmem_limit_bytes=vmem_limit),
            cost_estimate=cost,
        )(x2)

    s_tile = _S_TILE_MAX                               # multiple of 128
    n_si = pl.cdiv(S, s_tile)
    r_tile = _choose_row_tile(R, s_tile * itemsize, per_buf, granule)
    return pl.pallas_call(
        functools.partial(_pool_kernel_2d, spatial=S, s_tile=s_tile,
                          n_si=n_si, inv_spatial=inv_spatial),
        out_shape=jax.ShapeDtypeStruct((R, 1), jnp.float32),
        grid=(pl.cdiv(R, r_tile), n_si),
        in_specs=[pl.BlockSpec((r_tile, s_tile), lambda ri, si: (ri, si))],
        out_specs=pl.BlockSpec((r_tile, 1), lambda ri, si: (ri, 0)),
        scratch_shapes=[pltpu.VMEM((r_tile, 128), jnp.float32)],
        compiler_params=pltpu.CompilerParams(
            dimension_semantics=("parallel", "arbitrary"),
            vmem_limit_bytes=vmem_limit),
        cost_estimate=cost,
    )(x2)


def _head_kernel(pooled_ref, wt_ref, gamma_ref, beta_ref, o_ref):
    """pooled(B,C) @ Wt(C,E_pad) -> BatchNorm1d (training batch stats) -> LeakyReLU."""
    pooled = pooled_ref[...]                                              # (B, C) f32
    y = jnp.dot(pooled, wt_ref[...], preferred_element_type=jnp.float32)  # (B, E_pad)
    mean = jnp.mean(y, axis=0, keepdims=True)
    diff = y - mean
    var = jnp.mean(diff * diff, axis=0, keepdims=True)                    # biased (train)
    y_hat = diff * jax.lax.rsqrt(var + BN_EPS)
    z = y_hat * gamma_ref[...] + beta_ref[...]
    o_ref[...] = jnp.where(z >= 0, z, LEAKY_SLOPE * z).astype(o_ref.dtype)
    # TODO(synk): nn.BatchNorm1d training-mode running_mean/running_var momentum
    # updates are a module side effect and are not emitted here.


def generic_task_forward(x_nchw, weight, gamma, beta):
    """x_nchw: (B, C, H, W); weight: (E, C) as in nn.Linear; gamma, beta: (E,)."""
    B, C, H, W = x_nchw.shape
    E = weight.shape[0]
    R = B * C
    S = H * W

    vmem_limit, per_buf = _vmem_budget()

    # Contiguous-dim merge: metadata-only reshape, keeps x in its native dtype in HBM.
    x2 = x_nchw.reshape(R, S)
    pooled = _adaptive_avg_pool_rows(x2, vmem_limit, per_buf)
    pooled_bc = pooled.reshape(B, C)               # tiny tensor; free in XLA

    # Lane-dense epilogue: pad E to a multiple of 128, slice afterwards.
    # Weight kept in f32 for exact parity with PyTorch; for very large C*E this
    # whole-array-in-VMEM head should be C-tiled or cast to bf16.
    E_pad = ((E + 127) // 128) * 128
    wt = weight.T.astype(jnp.float32)              # (C, E)
    gamma2 = gamma.reshape(1, E).astype(jnp.float32)
    beta2 = beta.reshape(1, E).astype(jnp.float32)
    if E_pad != E:
        wt = jnp.pad(wt, ((0, 0), (0, E_pad - E)))
        gamma2 = jnp.pad(gamma2, ((0, 0), (0, E_pad - E)), constant_values=1.0)
        beta2 = jnp.pad(beta2, ((0, 0), (0, E_pad - E)))

    out = pl.pallas_call(
        _head_kernel,
        out_shape=jax.ShapeDtypeStruct((B, E_pad), jnp.float32),
        in_specs=[pl.BlockSpec(memory_space=pltpu.MemorySpace.VMEM)] * 4,
        out_specs=pl.BlockSpec(memory_space=pltpu.MemorySpace.VMEM),
        compiler_params=pltpu.CompilerParams(vmem_limit_bytes=vmem_limit),
    )(pooled_bc, wt, gamma2, beta2)

    return out[:, :E]


if __name__ == "__main__":
    # Small shapes consistent with the module: input_size == C, encoding_size == E.
    B, C, H, W = 2, 4, 16, 16
    E = 32

    key = jax.random.PRNGKey(0)
    kx, kw = jax.random.split(key)

    x = jax.random.normal(kx, (B, C, H, W), dtype=jnp.float32)

    # Deterministic synthetic params (mimics nn.Linear's uniform init scale).
    bound = 1.0 / (C ** 0.5)
    weight = jax.random.uniform(kw, (E, C), minval=-bound, maxval=bound,
                                dtype=jnp.float32)        # nn.Linear weight (E, C)
    gamma = jnp.ones((E,), dtype=jnp.float32)              # BatchNorm1d weight
    beta = jnp.zeros((E,), dtype=jnp.float32)              # BatchNorm1d bias

    out = generic_task_forward(x, weight, gamma, beta)
    jax.block_until_ready(out)

    assert out.shape == (B, E), out.shape
    assert bool(jnp.all(jnp.isfinite(out)))
    print("KERNEL_OK")
</pallas_src>

<mosaic_0001>
module attributes {stable_mosaic.version = 11 : i64} {
  func.func @_pool_kernel_1d(%arg0: i32, %arg1: memref<8x256xf32, #tpu.memory_space<vmem>>, %arg2: memref<8x1xf32, #tpu.memory_space<vmem>>) attributes {dimension_semantics = [#tpu.dimension_semantics<parallel>], iteration_bounds = array<i64: 1>, scalar_prefetch = 0 : i64, scratch_operands = 0 : i64, tpu.core_type = #tpu.core_type<tc>, window_params = [{transform_indices = @transform_0, window_bounds = array<i64: 8, 256>}, {transform_indices = @transform_1, window_bounds = array<i64: 8, 1>}]} {
    %c0 = arith.constant 0 : index
    %c0_0 = arith.constant 0 : index
    %0 = vector.load %arg1[%c0, %c0_0] : memref<8x256xf32, #tpu.memory_space<vmem>>, vector<8x256xf32>
    %cst = arith.constant dense<0.000000e+00> : vector<8xf32>
    %1 = vector.multi_reduction <add>, %0, %cst [1] : vector<8x256xf32> to vector<8xf32>
    %2 = vector.shape_cast %1 : vector<8xf32> to vector<8x1xf32>
    %cst_1 = arith.constant 3.906250e-03 : f32
    %3 = vector.broadcast %cst_1 : f32 to vector<8x1xf32>
    %4 = arith.mulf %2, %3 : vector<8x1xf32>
    %c0_2 = arith.constant 0 : index
    %c0_3 = arith.constant 0 : index
    %5 = vector.load %arg2[%c0_2, %c0_3] : memref<8x1xf32, #tpu.memory_space<vmem>>, vector<8x1xf32>
    tpu.vector_store %arg2[%c0_2, %c0_3], %4 {strides = array<i32>} : memref<8x1xf32, #tpu.memory_space<vmem>>, vector<8x1xf32>,
    return
  }
  func.func @transform_0(%arg0: i32) -> (i32, i32) {
    %c0_i32 = arith.constant 0 : i32
    %c0_i32_0 = arith.constant 0 : i32
    return %arg0, %c0_i32 : i32, i32
  }
  func.func @transform_1(%arg0: i32) -> (i32, i32) {
    %c0_i32 = arith.constant 0 : i32
    %c0_i32_0 = arith.constant 0 : i32
    return %arg0, %c0_i32 : i32, i32
  }
}

</mosaic_0001>

<bundles_post_ra>
// kernel: tpu_custom_call.1
= control target key start
LH: loop header
LB: loop body
LE: loop exit
PB: predicated region body
PF: predicated region fallthrough
CT: control target
= control target key end

     0   :  { %6 = vsyncpa [#allocation3], 0  ;;  %s56_s6 = smov [#allocation2]   ;;  %s73_s0 = inlined_call_operand.hbm [shape: f32[8,256], index: 0, kind: input, shape index: {}]   ;;  %s74_s1 = inlined_call_operand.vmem [shape: f32[8,1], index: 1, kind: output, shape index: {}]  }
   0x1   :  { %s13_s7 = sshll.u32 %s56_s6, 4  ;;  %s14_s7 = int_to_ptr.vmem [resolvable:$true] %s13_s7 }
   0x2   :  { %s42_s8 = scalar_lea.vmem %s14_s7, 256  ;;  %p47_p1 = scmp.lt.s32.totalorder %s14_s7, %s14_s7 }
   0x3   :  { %p43_p0 = scmp.ne.s32.totalorder %s14_s7, %s42_s8  ;;  %p48_p2 = scmp.lt.s32.totalorder %s42_s8, %s42_s8 }
   0x5   :  { %p49_p3 = por %p48_p2, %p47_p1 }
   0x7   :  { %p50_p4 = pnand %p49_p3, %p43_p0 }
   0x9   :  { %53 = shalt.err (!%p50_p4)
}
   0xa   :  { %16 = dma.hbm_to_vmem [thread:$0]  %s73_s0, 256, %s14_s7, [#allocation3]  }
   0xb   :  { %54 = dma.done.wait [#allocation3], 256  }
   0xc   :  { %55 = vsyncadd [#allocation3], 4294967040  ;;  %v20_v0 = vld [vmem:[#allocation2] sm:$0xff]  ;;  %v21_v1 = vld [vmem:[#allocation2 + $0x8] sm:$0xff]  ;;  %vm26_vm0 = vcmask 7168  }
   0xd   :  { %v22_v2 = vadd.f32 %v21_v1, %v20_v0 }
   0xf   :  { %23 = vadd.xlane.f32.xlu0 %v22_v2 }
  0x98   :  { %v24_v3 = vpop.xlane.xlu0 %23 }
  0x99   :  { %v25_v4 = vmul.f32 0.00390625, %v24_v3 }
  0x9b   :  { %27 = vst.msk [vmem:[%s74_s1] sm:$0xff] %vm26_vm0, %v25_v4 }
  0x9c   :  { %32 = vsyncpa [#allocation3], 1 }

</bundles_post_ra>
